<compile_context>
chip_gen: v5e
topology: v5e:2x2
jax: 0.10.0
libtpu: 0.0.40
codegen_flags: <defaults>
</compile_context>

<pallas_src>
import jax
import jax.numpy as jnp
from jax.experimental import pallas as pl
from jax.experimental.pallas import tpu as pltpu


def mlp_kernel(xt_ref, w1_ref, b1_ref, w2_ref, b2_ref, w3_ref, b3_ref, o_ref):
    # xt_ref: (D, Bt) bf16   -- batch on lanes
    # w1_ref: (64, D) bf16, b1_ref: (64, 1) f32
    # w2_ref: (32, 64) bf16, b2_ref: (32, 1) f32
    # w3_ref: (32, 1) f32,   b3_ref: (1, 1) f32
    xt = xt_ref[...]

    h1 = jnp.dot(w1_ref[...], xt, preferred_element_type=jnp.float32)      # (64, Bt) f32
    h1 = jnp.maximum(h1 + b1_ref[...], 0.0)

    h2 = jnp.dot(w2_ref[...], h1.astype(jnp.bfloat16),
                 preferred_element_type=jnp.float32)                        # (32, Bt) f32
    h2 = jnp.maximum(h2 + b2_ref[...], 0.0)

    # Final 32 -> 1 layer: VPU multiply + sublane reduction (keeps the MXU free,
    # result already lane-dense).
    out = jnp.sum(h2 * w3_ref[...], axis=0, keepdims=True) + b3_ref[...]    # (1, Bt)
    o_ref[...] = out.astype(o_ref.dtype)


def mlp_forward(x, params, *, batch_tile=2048):
    """x: (B, input_size) float32. params: W1,b1,W2,b2,W3,b3 with W stored (in, out)."""
    B, D = x.shape
    W1, b1 = params["W1"], params["b1"]
    W2, b2 = params["W2"], params["b2"]
    W3, b3 = params["W3"], params["b3"]
    H1, H2 = W1.shape[1], W2.shape[1]

    # Lane-dense batch tiling: every tile is a multiple of 128 lanes.
    batch_tile = max(128, (batch_tile // 128) * 128)
    b128 = pl.cdiv(B, 128) * 128                 # batch rounded up to 128 lanes
    tile = min(batch_tile, b128)                 # tile is a multiple of 128
    n_tiles = pl.cdiv(B, tile)
    Bp = n_tiles * tile

    # Transposed, bf16 input: (D, Bp) with batch on the lane axis; zero-pad the tail.
    xt = x.T.astype(jnp.bfloat16)
    if Bp != B:
        xt = jnp.pad(xt, ((0, 0), (0, Bp - B)))

    w1t = W1.T.astype(jnp.bfloat16)                    # (64, D)
    w2t = W2.T.astype(jnp.bfloat16)                    # (32, 64)
    w3c = W3.astype(jnp.float32)                       # (32, 1)  f32 for the VPU reduction
    b1c = b1.reshape(H1, 1).astype(jnp.float32)        # (64, 1)
    b2c = b2.reshape(H2, 1).astype(jnp.float32)        # (32, 1)
    b3c = b3.reshape(1, 1).astype(jnp.float32)         # (1, 1)

    # Constant index_maps -> weights/biases stay resident in VMEM across grid steps.
    full = lambda shape: pl.BlockSpec(shape, lambda i: (0,) * len(shape))

    out_t = pl.pallas_call(
        mlp_kernel,
        out_shape=jax.ShapeDtypeStruct((1, Bp), jnp.float32),
        grid_spec=pltpu.PrefetchScalarGridSpec(
            num_scalar_prefetch=0,
            grid=(n_tiles,),
            in_specs=[
                pl.BlockSpec((D, tile), lambda i: (0, i)),  # x tile (batch on lanes)
                full((H1, D)), full((H1, 1)),               # layer 1
                full((H2, H1)), full((H2, 1)),              # layer 2
                full((H2, 1)), full((1, 1)),                # layer 3
            ],
            out_specs=pl.BlockSpec((1, tile), lambda i: (0, i)),
        ),
        compiler_params=pltpu.CompilerParams(
            dimension_semantics=("parallel",),
        ),
    )(xt, w1t, b1c, w2t, b2c, w3c, b3c)

    # Back to the PyTorch output layout (B, 1), dropping any batch padding.
    return out_t[:, :B].T


def init_params(key, input_size):
    """Same init scale as torch.nn.Linear; W stored (in, out) so y = x @ W + b."""
    sizes = [(input_size, 64), (64, 32), (32, 1)]
    params = {}
    for n, (fin, fout) in enumerate(sizes, start=1):
        key, kw, kb = jax.random.split(key, 3)
        bound = 1.0 / jnp.sqrt(fin)
        params[f"W{n}"] = jax.random.uniform(kw, (fin, fout), jnp.float32, -bound, bound)
        params[f"b{n}"] = jax.random.uniform(kb, (1, fout), jnp.float32, -bound, bound)
    return params


def mlp_reference(x, params):
    """Reference mirroring the kernel's numerics (bf16 MXU operands, f32 accumulation)."""
    xb = x.astype(jnp.bfloat16)
    h1 = jnp.dot(xb, params["W1"].astype(jnp.bfloat16),
                 preferred_element_type=jnp.float32) + params["b1"]
    h1 = jnp.maximum(h1, 0.0)
    h2 = jnp.dot(h1.astype(jnp.bfloat16), params["W2"].astype(jnp.bfloat16),
                 preferred_element_type=jnp.float32) + params["b2"]
    h2 = jnp.maximum(h2, 0.0)
    return jnp.dot(h2, params["W3"], preferred_element_type=jnp.float32) + params["b3"]


if __name__ == "__main__":
    key = jax.random.PRNGKey(0)
    input_size = 16

    kx, kp, kx2 = jax.random.split(key, 3)
    params = init_params(kp, input_size)

    # Small single-tile check (batch padded to one lane-dense 128-wide tile).
    x_small = jax.random.normal(kx, (8, input_size), jnp.float32)
    out_small = jax.block_until_ready(mlp_forward(x_small, params))
    ref_small = mlp_reference(x_small, params)
    assert out_small.shape == (8, 1), out_small.shape
    assert jnp.allclose(out_small, ref_small, atol=1e-4, rtol=1e-4)

    # Multi-tile check with a non-divisible batch (exercises padding + pipelined grid).
    x_big = jax.random.normal(kx2, (300, input_size), jnp.float32)
    out_big = jax.block_until_ready(mlp_forward(x_big, params, batch_tile=128))
    ref_big = mlp_reference(x_big, params)
    assert out_big.shape == (300, 1), out_big.shape
    assert jnp.allclose(out_big, ref_big, atol=1e-4, rtol=1e-4)

    print("KERNEL_OK")
</pallas_src>

<mosaic_0001>
module attributes {stable_mosaic.version = 11 : i64} {
  func.func @mlp_kernel(%arg0: i32, %arg1: memref<16x128xbf16, #tpu.memory_space<vmem>>, %arg2: memref<64x16xbf16, #tpu.memory_space<vmem>>, %arg3: memref<64x1xf32, #tpu.memory_space<vmem>>, %arg4: memref<32x64xbf16, #tpu.memory_space<vmem>>, %arg5: memref<32x1xf32, #tpu.memory_space<vmem>>, %arg6: memref<32x1xf32, #tpu.memory_space<vmem>>, %arg7: memref<1x1xf32, #tpu.memory_space<vmem>>, %arg8: memref<1x128xf32, #tpu.memory_space<vmem>>) attributes {dimension_semantics = [#tpu.dimension_semantics<parallel>], iteration_bounds = array<i64: 1>, scalar_prefetch = 0 : i64, scratch_operands = 0 : i64, tpu.core_type = #tpu.core_type<tc>, window_params = [{transform_indices = @transform_0, window_bounds = array<i64: 16, 128>}, {pipeline_mode = #tpu.pipeline_mode<synchronous>, transform_indices = @transform_1, window_bounds = array<i64: 64, 16>}, {pipeline_mode = #tpu.pipeline_mode<synchronous>, transform_indices = @transform_2, window_bounds = array<i64: 64, 1>}, {pipeline_mode = #tpu.pipeline_mode<synchronous>, transform_indices = @transform_3, window_bounds = array<i64: 32, 64>}, {pipeline_mode = #tpu.pipeline_mode<synchronous>, transform_indices = @transform_4, window_bounds = array<i64: 32, 1>}, {pipeline_mode = #tpu.pipeline_mode<synchronous>, transform_indices = @transform_5, window_bounds = array<i64: 32, 1>}, {pipeline_mode = #tpu.pipeline_mode<synchronous>, transform_indices = @transform_6, window_bounds = array<i64: 1, 1>}, {transform_indices = @transform_7, window_bounds = array<i64: 1, 128>}]} {
    %c0 = arith.constant 0 : index
    %c0_0 = arith.constant 0 : index
    %0 = vector.load %arg1[%c0, %c0_0] : memref<16x128xbf16, #tpu.memory_space<vmem>>, vector<16x128xbf16>
    %c0_1 = arith.constant 0 : index
    %c0_2 = arith.constant 0 : index
    %1 = vector.load %arg2[%c0_1, %c0_2] : memref<64x16xbf16, #tpu.memory_space<vmem>>, vector<64x16xbf16>
    %cst = arith.constant dense<0.000000e+00> : vector<64x128xf32>
    %2 = tpu.matmul %1, %0, %cst {dimension_numbers = #tpu.dot_dimension_numbers<[1], [0], [0], [1], [0, 0, 1, 1], [], []>} : vector<64x16xbf16>, vector<16x128xbf16>, vector<64x128xf32> -> vector<64x128xf32>
    %c0_3 = arith.constant 0 : index
    %c0_4 = arith.constant 0 : index
    %3 = vector.load %arg3[%c0_3, %c0_4] : memref<64x1xf32, #tpu.memory_space<vmem>>, vector<64x1xf32>
    %4 = vector.broadcast %3 : vector<64x1xf32> to vector<64x128xf32>
    %5 = arith.addf %2, %4 : vector<64x128xf32>
    %cst_5 = arith.constant 0.000000e+00 : f32
    %6 = vector.broadcast %cst_5 : f32 to vector<64x128xf32>
    %7 = arith.maximumf %5, %6 : vector<64x128xf32>
    %c0_6 = arith.constant 0 : index
    %c0_7 = arith.constant 0 : index
    %8 = vector.load %arg4[%c0_6, %c0_7] : memref<32x64xbf16, #tpu.memory_space<vmem>>, vector<32x64xbf16>
    %9 = arith.truncf %7 : vector<64x128xf32> to vector<64x128xbf16>
    %cst_8 = arith.constant dense<0.000000e+00> : vector<32x128xf32>
    %10 = tpu.matmul %8, %9, %cst_8 {dimension_numbers = #tpu.dot_dimension_numbers<[1], [0], [0], [1], [0, 0, 1, 1], [], []>} : vector<32x64xbf16>, vector<64x128xbf16>, vector<32x128xf32> -> vector<32x128xf32>
    %c0_9 = arith.constant 0 : index
    %c0_10 = arith.constant 0 : index
    %11 = vector.load %arg5[%c0_9, %c0_10] : memref<32x1xf32, #tpu.memory_space<vmem>>, vector<32x1xf32>
    %12 = vector.broadcast %11 : vector<32x1xf32> to vector<32x128xf32>
    %13 = arith.addf %10, %12 : vector<32x128xf32>
    %cst_11 = arith.constant 0.000000e+00 : f32
    %14 = vector.broadcast %cst_11 : f32 to vector<32x128xf32>
    %15 = arith.maximumf %13, %14 : vector<32x128xf32>
    %c0_12 = arith.constant 0 : index
    %c0_13 = arith.constant 0 : index
    %16 = vector.load %arg6[%c0_12, %c0_13] : memref<32x1xf32, #tpu.memory_space<vmem>>, vector<32x1xf32>
    %17 = vector.broadcast %16 : vector<32x1xf32> to vector<32x128xf32>
    %18 = arith.mulf %15, %17 : vector<32x128xf32>
    %cst_14 = arith.constant dense<0.000000e+00> : vector<128xf32>
    %19 = vector.multi_reduction <add>, %18, %cst_14 [0] : vector<32x128xf32> to vector<128xf32>
    %20 = vector.shape_cast %19 : vector<128xf32> to vector<1x128xf32>
    %c0_15 = arith.constant 0 : index
    %c0_16 = arith.constant 0 : index
    %21 = vector.load %arg7[%c0_15, %c0_16] : memref<1x1xf32, #tpu.memory_space<vmem>>, vector<1x1xf32>
    %22 = vector.broadcast %21 : vector<1x1xf32> to vector<1x128xf32>
    %23 = arith.addf %20, %22 : vector<1x128xf32>
    %c0_17 = arith.constant 0 : index
    %c0_18 = arith.constant 0 : index
    %24 = vector.load %arg8[%c0_17, %c0_18] : memref<1x128xf32, #tpu.memory_space<vmem>>, vector<1x128xf32>
    tpu.vector_store %arg8[%c0_17, %c0_18], %23 {strides = array<i32>} : memref<1x128xf32, #tpu.memory_space<vmem>>, vector<1x128xf32>,
    return
  }
  func.func @transform_0(%arg0: i32) -> (i32, i32) {
    %c0_i32 = arith.constant 0 : i32
    %c0_i32_0 = arith.constant 0 : i32
    return %c0_i32, %arg0 : i32, i32
  }
  func.func @transform_1(%arg0: i32) -> (i32, i32) {
    %c0_i32 = arith.constant 0 : i32
    %c0_i32_0 = arith.constant 0 : i32
    %c0_i32_1 = arith.constant 0 : i32
    return %c0_i32, %c0_i32_0 : i32, i32
  }
  func.func @transform_2(%arg0: i32) -> (i32, i32) {
    %c0_i32 = arith.constant 0 : i32
    %c0_i32_0 = arith.constant 0 : i32
    %c0_i32_1 = arith.constant 0 : i32
    return %c0_i32, %c0_i32_0 : i32, i32
  }
  func.func @transform_3(%arg0: i32) -> (i32, i32) {
    %c0_i32 = arith.constant 0 : i32
    %c0_i32_0 = arith.constant 0 : i32
    %c0_i32_1 = arith.constant 0 : i32
    return %c0_i32, %c0_i32_0 : i32, i32
  }
  func.func @transform_4(%arg0: i32) -> (i32, i32) {
    %c0_i32 = arith.constant 0 : i32
    %c0_i32_0 = arith.constant 0 : i32
    %c0_i32_1 = arith.constant 0 : i32
    return %c0_i32, %c0_i32_0 : i32, i32
  }
  func.func @transform_5(%arg0: i32) -> (i32, i32) {
    %c0_i32 = arith.constant 0 : i32
    %c0_i32_0 = arith.constant 0 : i32
    %c0_i32_1 = arith.constant 0 : i32
    return %c0_i32, %c0_i32_0 : i32, i32
  }
  func.func @transform_6(%arg0: i32) -> (i32, i32) {
    %c0_i32 = arith.constant 0 : i32
    %c0_i32_0 = arith.constant 0 : i32
    %c0_i32_1 = arith.constant 0 : i32
    return %c0_i32, %c0_i32_0 : i32, i32
  }
  func.func @transform_7(%arg0: i32) -> (i32, i32) {
    %c0_i32 = arith.constant 0 : i32
    %c0_i32_0 = arith.constant 0 : i32
    return %c0_i32, %arg0 : i32, i32
  }
}

</mosaic_0001>

<bundles_post_ra>
// kernel: tpu_custom_call.1
= control target key start
LH: loop header
LB: loop body
LE: loop exit
PB: predicated region body
PF: predicated region fallthrough
CT: control target
= control target key end

     0   :  { %s496_s0 = inlined_call_operand.vmem [shape: bf16[16,128], index: 0, kind: input, shape index: {}]   ;;  %s497_s1 = inlined_call_operand.vmem [shape: bf16[64,16], index: 1, kind: input, shape index: {}]   ;;  %s498_s2 = inlined_call_operand.vmem [shape: f32[64,1], index: 2, kind: input, shape index: {}]   ;;  %s499_s3 = inlined_call_operand.vmem [shape: bf16[32,64], index: 3, kind: input, shape index: {}]   ;;  %s500_s4 = inlined_call_operand.vmem [shape: f32[32,1], index: 4, kind: input, shape index: {}]   ;;  %s501_s5 = inlined_call_operand.vmem [shape: f32[32,1], index: 5, kind: input, shape index: {}]   ;;  %s502_s6 = inlined_call_operand.<no memory space> [shape: f32[1,1], index: 6, kind: input, shape index: {}]   ;;  %s503_s7 = inlined_call_operand.hbm [shape: f32[1,128], index: 7, kind: output, shape index: {}]  }
   0x1   :  { %v12_v0 = vstv %s502_s6 }
   0x2   :  { %13 = vst [vmem:[#allocation2] sm:$0x1] %v12_v0 }
   0x3   :  { %v46_v1 = vld [vmem:[%s498_s2 + $0x30] sm:$0xff]  ;;  %v44_v2 = vld [vmem:[%s498_s2 + $0x20] sm:$0xff]  ;;  %v375_v4 = vmov 0   ;;  %vm114_vm0 = vcmask 130048  }
   0x4   :  { %v332_v3 = vld [vmem:[%s496_s0] sm:$0xff]  ;;  %346 = vset.pattern.permute.xlu0 %v375_v4  ;;  %347 = vset.pattern.permute.xlu1 %v375_v4  ;;  %v335_v5 = vld [vmem:[%s497_s1 + $0x10] sm:$0xff] }
   0x5   :  { %80 = vperm.xlu0 %346, %v46_v1   ;;  %70 = vperm.xlu1 %347, %v44_v2   ;;  %v333_v6 = vld [vmem:[%s497_s1] sm:$0xff]  ;;  %v42_v7 = vld [vmem:[%s498_s2 + $0x10] sm:$0xff] }
   0x6   :  { %339 = vmatpush.bf16.msra.mxu2 %v332_v3  ;;  %134 = vmatpush.bf16.msra.mxu0 %v332_v3 }
   0x7   :  { %348 = vset.pattern.permute.xlu2 %v375_v4 }
   0x8   :  { %14 = vsyncpa [#allocation4], 0  ;;  %v47_v8 = vld [vmem:[%s498_s2 + $0x38] sm:$0xff]  ;;  %v45_v9 = vld [vmem:[%s498_s2 + $0x28] sm:$0xff]  ;;  %60 = vperm.xlu2 %348, %v42_v7   ;;  %vm206_vm1 = vcmask 523264   ;;  %s289_s21 = sshll.u32 %s503_s7, 4  ;;  %s290_s21 = int_to_ptr.hbm [resolvable:$true] %s289_s21 }
   0x9   :  { %320 = vmatmul.msk.bf16.vlgmr.msra.gmra.mxu2 %vm114_vm0, %v335_v5  ;;  %318 = vmatmul.msk.bf16.vlgmr.msra.gmra.mxu0 %vm114_vm0, %v333_v6  ;;  %v43_v10 = vld [vmem:[%s498_s2 + $0x18] sm:$0xff]  ;;  %v40_v11 = vld [vmem:[%s498_s2] sm:$0xff]  ;;  %v41_v12 = vld [vmem:[%s498_s2 + $0x8] sm:$0xff] }
   0xa   :  { %v336_v13 = vld [vmem:[%s497_s1 + $0x18] sm:$0xff]  ;;  %v334_v14 = vld [vmem:[%s497_s1 + $0x8] sm:$0xff]  ;;  %v172_v15 = vld [vmem:[%s500_s4] sm:$0xff] }
   0xb   :  { %v173_v16 = vld [vmem:[%s500_s4 + $0x8] sm:$0xff]  ;;  %v174_v17 = vld [vmem:[%s500_s4 + $0x10] sm:$0xff]  ;;  %v175_v18 = vld [vmem:[%s500_s4 + $0x18] sm:$0xff] }
   0xc   :  { %v236_v19 = vld [vmem:[%s501_s5] sm:$0xff]  ;;  %v237_v20 = vld [vmem:[%s501_s5 + $0x8] sm:$0xff]  ;;  %v238_v21 = vld [vmem:[%s501_s5 + $0x10] sm:$0xff] }
   0xd   :  { %85 = vperm.xlu0 %346, %v47_v8   ;;  %75 = vperm.xlu1 %347, %v45_v9   ;;  %v239_v22 = vld [vmem:[%s501_s5 + $0x18] sm:$0xff]  ;;  %v273_v23 = vld [vmem:[#allocation2] sm:$0x1]  ;;  %v338_v61 = vld [vmem:[%s499_s3 + $0x8] sm:$0xff] }
   0xe   :  { %v337_v60 = vld [vmem:[%s499_s3] sm:$0xff]  ;;  %s376_s3 = smov [#allocation3]  }
   0xf   :  { %s287_s18 = sshll.u32 %s376_s3, 4  ;;  %s288_s18 = int_to_ptr.vmem [resolvable:$true] %s287_s18 }
  0x10   :  { %65 = vperm.xlu2 %348, %v43_v10  }
  0x15   :  { %50 = vperm.xlu0 %346, %v40_v11   ;;  %55 = vperm.xlu1 %347, %v41_v12  }
  0x18   :  { %178 = vperm.xlu2 %348, %v172_v15  }
  0x19   :  { %321 = vmatmul.msk.bf16.gmra.mxu2 %vm114_vm0, %v336_v13  ;;  %319 = vmatmul.msk.bf16.gmra.mxu0 %vm114_vm0, %v334_v14 }
  0x1d   :  { %183 = vperm.xlu0 %346, %v173_v16   ;;  %188 = vperm.xlu1 %347, %v174_v17  }
  0x20   :  { %193 = vperm.xlu2 %348, %v175_v18  }
  0x25   :  { %242 = vperm.xlu0 %346, %v236_v19   ;;  %247 = vperm.xlu1 %347, %v237_v20  }
  0x28   :  { %252 = vperm.xlu2 %348, %v238_v21  }
  0x2d   :  { %257 = vperm.xlu0 %346, %v239_v22   ;;  %276 = vperm.xlu1 %347, %v273_v23  }
  0x62   :  { %v61_v32 = vpop.permute.xlu2 %60 }
  0x6a   :  { %v66_v43 = vpop.permute.xlu2 %65 }
  0x72   :  { %v179_v62 = vpop.permute.xlu2 %178 }
  0x77   :  { %v81_v28 = vpop.permute.xlu0 %80  ;;  %v71_v29 = vpop.permute.xlu1 %70 }
  0x7a   :  { %v194_v3 = vpop.permute.xlu2 %193 }
  0x7f   :  { %v86_v33 = vpop.permute.xlu0 %85  ;;  %v76_v34 = vpop.permute.xlu1 %75 }
  0x82   :  { %v253_v18 = vpop.permute.xlu2 %252 }
  0x86   :  { %v136_v24 = vpop.f32.mrf.mxu0 }
  0x87   :  { %v51_v48 = vpop.permute.xlu0 %50  ;;  %v56_v50 = vpop.permute.xlu1 %55 }
  0x88   :  { %v137_v51 = vadd.f32 %v136_v24, %v51_v48 }
  0x8a   :  { %v156_v56 = vmax.f32 %v137_v51, 0.0 }
  0x8c   :  { %v146_v25 = vpop.f32.mrf.mxu2 }
  0x8d   :  { %v147_v40 = vadd.f32 %v146_v25, %v71_v29 }
  0x8e   :  { %v138_v26 = vpop.f32.mrf.mxu0 }
  0x8f   :  { %v160_v49 = vmax.f32 %v147_v40, 0.0  ;;  %v139_v52 = vadd.f32 %v138_v26, %v56_v50  ;;  %v184_v63 = vpop.permute.xlu0 %183  ;;  %v189_v1 = vpop.permute.xlu1 %188 }
  0x91   :  { %v157_v57 = vmax.f32 %v139_v52, 0.0 }
  0x93   :  { %v168_v59 = vpack.c.bf16 %v157_v57, %v156_v56 }
  0x94   :  { %v148_v27 = vpop.f32.mrf.mxu2 }
  0x95   :  { %v149_v37 = vadd.f32 %v148_v27, %v76_v34 }
  0x96   :  { %v141_v30 = vpop.f32.mrf.mxu0 }
  0x97   :  { %v161_v44 = vmax.f32 %v149_v37, 0.0  ;;  %v142_v45 = vadd.f32 %v141_v30, %v61_v32  ;;  %v243_v5 = vpop.permute.xlu0 %242  ;;  %v248_v11 = vpop.permute.xlu1 %247 }
  0x99   :  { %v158_v53 = vmax.f32 %v142_v45, 0.0  ;;  %v170_v55 = vpack.c.bf16 %v161_v44, %v160_v49 }
  0x9c   :  { %v151_v31 = vpop.f32.mrf.mxu2 }
  0x9d   :  { %v152_v35 = vadd.f32 %v151_v31, %v81_v28 }
  0x9e   :  { %v143_v39 = vpop.f32.mrf.mxu0 }
  0x9f   :  { %v162_v41 = vmax.f32 %v152_v35, 0.0  ;;  %v144_v46 = vadd.f32 %v143_v39, %v66_v43  ;;  %v258_v21 = vpop.permute.xlu0 %257  ;;  %v277_v29 = vpop.permute.xlu1 %276 }
  0xa0   :  { %v279_v31 = vperm.slane %v277_v29, 0 }
  0xa1   :  { %v159_v54 = vmax.f32 %v144_v46, 0.0 }
  0xa3   :  { %v169_v58 = vpack.c.bf16 %v159_v54, %v158_v53 }
  0xa4   :  { %v153_v36 = vpop.f32.mrf.mxu2 }
  0xa5   :  { %v154_v38 = vadd.f32 %v153_v36, %v86_v33 }
  0xa7   :  { %v163_v42 = vmax.f32 %v154_v38, 0.0 }
  0xa9   :  { %v171_v47 = vpack.c.bf16 %v163_v42, %v162_v41 }
  0xab   :  { %217 = vmatpush.bf16.msra.mxu1 %v171_v47  ;;  %340 = vmatpush.bf16.msra.mxu3 %v171_v47 }
  0xaf   :  { %218 = vmatpush.bf16.msra.mxu1 %v170_v55  ;;  %341 = vmatpush.bf16.msra.mxu3 %v170_v55 }
  0xb3   :  { %219 = vmatpush.bf16.msra.mxu1 %v169_v58  ;;  %342 = vmatpush.bf16.msra.mxu3 %v169_v58 }
  0xb7   :  { %220 = vmatpush.bf16.msra.mxu1 %v168_v59  ;;  %343 = vmatpush.bf16.msra.mxu3 %v168_v59 }
  0xba   :  { %330 = vmatmul.msk.bf16.vlgmr.msra.gmra.mxu1 %vm206_vm1, %v337_v60  ;;  %331 = vmatmul.msk.bf16.vlgmr.msra.gmra.mxu3 %vm206_vm1, %v338_v61 }
 0x137   :  { %v222_v0 = vpop.f32.mrf.mxu1 }
 0x138   :  { %v223_v2 = vadd.f32 %v222_v0, %v179_v62 }
 0x13a   :  { %v232_v7 = vmax.f32 %v223_v2, 0.0 }
 0x13c   :  { %v260_v12 = vmul.f32 %v243_v5, %v232_v7 }
 0x13d   :  { %v227_v4 = vpop.f32.mrf.mxu3 }
 0x13e   :  { %v228_v8 = vadd.f32 %v227_v4, %v189_v1 }
 0x13f   :  { %v224_v6 = vpop.f32.mrf.mxu1 }
 0x140   :  { %v225_v9 = vadd.f32 %v224_v6, %v184_v63  ;;  %v234_v13 = vmax.f32 %v228_v8, 0.0 }
 0x142   :  { %v233_v10 = vmax.f32 %v225_v9, 0.0  ;;  %v262_v19 = vmul.f32 %v253_v18, %v234_v13 }
 0x144   :  { %v261_v14 = vmul.f32 %v248_v11, %v233_v10 }
 0x145   :  { %v229_v15 = vpop.f32.mrf.mxu3 }
 0x146   :  { %v264_v16 = vadd.f32 %v261_v14, %v260_v12  ;;  %v230_v17 = vadd.f32 %v229_v15, %v194_v3 }
 0x148   :  { %v235_v20 = vmax.f32 %v230_v17, 0.0  ;;  %v265_v23 = vadd.f32 %v264_v16, %v262_v19 }
 0x14a   :  { %v263_v22 = vmul.f32 %v258_v21, %v235_v20 }
 0x14c   :  { %v266_v24 = vadd.f32 %v265_v23, %v263_v22 }
 0x14e   :  { %v267_v25 = vrot.slane %v266_v24, 4 }
 0x150   :  { %v268_v26 = vadd.f32 %v267_v25, %v266_v24 }
 0x152   :  { %v269_v27 = vrot.slane %v268_v26, 2 }
 0x154   :  { %v270_v28 = vadd.f32 %v269_v27, %v268_v26 }
 0x156   :  { %v271_v30 = vrot.slane %v270_v28, 1 }
 0x158   :  { %v272_v32 = vadd.f32 %v271_v30, %v270_v28 }
 0x15a   :  { %v280_v33 = vadd.f32 %v279_v31, %v272_v32 }
 0x15c   :  { %281 = vst [vmem:[#allocation3] sm:$0x1] %v280_v33 }
 0x15d   :  { %292 = dma.vmem_to_hbm [thread:$0]  %s288_s18, 16, %s290_s21, [#allocation4]  }
 0x15e   :  { %373 = dma.done.wait [#allocation4], 16  }
 0x15f   :  { %374 = vsyncadd [#allocation4], 4294967280 }
 0x160   :  { %297 = vsyncpa [#allocation4], 1 }

</bundles_post_ra>
